<compile_context>
chip_gen: v5e
topology: v5e:2x2
jax: 0.10.0
libtpu: 0.0.40
codegen_flags: <defaults>
</compile_context>

<pallas_src>
import math

import jax
import jax.numpy as jnp
from jax.experimental import pallas as pl
from jax.experimental.pallas import tpu as pltpu

NEG_INF = -1e9  # matches torch masked_fill_(attn_mask, -1000000000.0)


def _vmem_budget_bytes():
    """Generation-aware usable-VMEM budget (~70% of physical capacity)."""
    try:
        phys = int(getattr(pltpu.get_tpu_info(), "vmem_capacity_bytes"))
    except Exception:
        phys = 64 * 1024 * 1024  # conservative fallback (v7x-sized)
    return int(phys * 0.70)


def _block_bytes(blk, tq, S_k, Dk, Dv, mq):
    """Rough VMEM bytes for one grid step: double-buffered streams + live temporaries."""
    in_b = 4 * blk * (tq * Dk + S_k * Dk + S_k * Dv + mq * S_k)      # f32/int32 inputs
    out_b = 4 * blk * (tq * Dv + tq * S_k)                           # f32 outputs
    tmp_b = (4 * blk * (3 * tq * S_k + tq * Dv)                      # f32 scores/exp/ctx
             + 2 * blk * (tq * Dk + S_k * Dk + S_k * Dv + tq * S_k))  # bf16 operand copies
    return 2 * (in_b + out_b) + tmp_b


def _plan_tiles(BH, S_q, S_k, Dk, Dv, mq, budget):
    """Pick (blk over B*H, tq over S_q): prefer large tq (<=512, multiple of 8), then the
    largest blk fitting the VMEM budget; force >=2 B*H grid steps when B*H >= 2 so the
    'parallel' axis can shard across v7x's two TensorCores."""
    tq_cands = [t for t in range(min(S_q, 512), 0, -1)
                if S_q % t == 0 and (t % 8 == 0 or t == S_q)] or [S_q]
    blk_cands = [b for b in range(BH, 0, -1) if BH % b == 0]
    for tq in tq_cands:
        for blk in blk_cands:
            if _block_bytes(blk, tq, S_k, Dk, Dv, mq) <= budget:
                if BH >= 2 and BH // blk < 2:
                    blk = max(b for b in blk_cands if BH // b >= 2)
                return blk, tq
    return 1, tq_cands[-1]


def _spec(shape, index_map, pipe=None):
    if pipe is None:
        return pl.BlockSpec(shape, index_map)
    return pl.BlockSpec(shape, index_map, pipeline_mode=pipe)


def scaled_dot_product_attention(Q, K, V, attn_mask, d_k):
    """Pallas port of ScaledDotProductAttention.forward(Q, K, V, attn_mask, d_k).

    Q, K: (B, H, S, d_k) f32;  V: (B, H, S, d_v) f32
    attn_mask: bool/int, broadcastable to (B, H, S_q, S_k); nonzero = masked position
    d_k: static Python scalar (exactly how the PyTorch call site passes it)
    returns (context, attn): (B, H, S_q, d_v) f32, (B, H, S_q, S_k) f32
    """
    B, H, S_q, Dk = Q.shape
    S_k = K.shape[2]
    Dv = V.shape[3]
    BH = B * H
    scale = 1.0 / math.sqrt(d_k)  # TODO(synk): d_k is baked statically at trace time.

    # Wrapper-side layout plumbing (free XLA reshapes): one leading batch*heads dim so the
    # kernel is two leading-batch matmuls instead of a per-head loop.
    q = Q.reshape(BH, S_q, Dk)
    k = K.reshape(BH, S_k, Dk)
    v = V.reshape(BH, S_k, Dv)

    # Compact the mask when it is query-independent (the pad-mask case this module is fed):
    # keep it (BH, 1, S_k) and let the kernel broadcast, instead of materializing a full
    # (BH, S_q, S_k) int32 stream in HBM.
    m = jnp.asarray(attn_mask)
    while m.ndim < 4:
        m = m[None]
    q_indep = (m.shape[-2] == 1)
    if q_indep:
        m = jnp.broadcast_to(m, (B, H, 1, S_k)).reshape(BH, 1, S_k).astype(jnp.int32)
        mq = 1
    else:
        m = jnp.broadcast_to(m, (B, H, S_q, S_k)).reshape(BH, S_q, S_k).astype(jnp.int32)
        mq = S_q

    budget = _vmem_budget_bytes()
    blk, tq = _plan_tiles(BH, S_q, S_k, Dk, Dv, mq, budget)
    nbh, nq = BH // blk, S_q // tq
    grid = (nbh, nq)
    # A single-step grid gets no overlap from double buffering; halve the footprint then.
    pipe = pl.Buffered(1) if nbh * nq == 1 else None

    def kernel(q_ref, k_ref, v_ref, m_ref, ctx_ref, attn_ref):
        # Fold 1/sqrt(d_k) into Q, then feed the MXU bf16 operands with f32 accumulation.
        qb = (q_ref[...] * scale).astype(jnp.bfloat16)          # (blk, tq, Dk)
        kb = k_ref[...].astype(jnp.bfloat16)                    # (blk, S_k, Dk)
        s = jnp.einsum('bqd,bkd->bqk', qb, kb,
                       preferred_element_type=jnp.float32)      # (blk, tq, S_k) f32
        s = jnp.where(m_ref[...] != 0, NEG_INF, s)              # masked_fill_ (broadcasts)
        s = s - jnp.max(s, axis=-1, keepdims=True)              # stable softmax (identical result)
        p = jnp.exp(s)
        inv = pl.reciprocal(jnp.sum(p, axis=-1, keepdims=True), approx=True)
        attn = p * inv
        attn_ref[...] = attn
        ctx_ref[...] = jnp.einsum('bqk,bkd->bqd',
                                  attn.astype(jnp.bfloat16),
                                  v_ref[...].astype(jnp.bfloat16),
                                  preferred_element_type=jnp.float32)

    m_spec = (_spec((blk, 1, S_k), lambda i, j: (i, 0, 0), pipe) if q_indep
              else _spec((blk, tq, S_k), lambda i, j: (i, j, 0), pipe))

    ctx, attn = pl.pallas_call(
        kernel,
        out_shape=(jax.ShapeDtypeStruct((BH, S_q, Dv), jnp.float32),
                   jax.ShapeDtypeStruct((BH, S_q, S_k), jnp.float32)),
        grid=grid,
        in_specs=[_spec((blk, tq, Dk), lambda i, j: (i, j, 0), pipe),
                  _spec((blk, S_k, Dk), lambda i, j: (i, 0, 0), pipe),
                  _spec((blk, S_k, Dv), lambda i, j: (i, 0, 0), pipe),
                  m_spec],
        out_specs=[pl.BlockSpec((blk, tq, Dv), lambda i, j: (i, j, 0)),
                   pl.BlockSpec((blk, tq, S_k), lambda i, j: (i, j, 0))],
        compiler_params=pltpu.CompilerParams(
            dimension_semantics=("parallel", "parallel"),
            vmem_limit_bytes=budget),
    )(q, k, v, m)

    return ctx.reshape(B, H, S_q, Dv), attn.reshape(B, H, S_q, S_k)


# ----------------------------- pure-JAX reference (for validation) -----------------------------
def reference_sdpa(Q, K, V, attn_mask, d_k):
    scores = jnp.einsum('bhqd,bhkd->bhqk', Q, K) / math.sqrt(d_k)
    scores = jnp.where(jnp.broadcast_to(attn_mask, scores.shape), NEG_INF, scores)
    attn = jax.nn.softmax(scores, axis=-1)
    context = jnp.einsum('bhqk,bhkd->bhqd', attn, V)
    return context, attn


# ----------------------------- main -----------------------------
if __name__ == "__main__":
    d_k = d_v = 64            # fixed by the source file (d_k = d_v = 64)
    B, H, S = 2, 4, 8         # small deterministic shapes

    key = jax.random.PRNGKey(0)
    kq, kk, kv = jax.random.split(key, 3)
    Q = jax.random.normal(kq, (B, H, S, d_k), dtype=jnp.float32)
    K = jax.random.normal(kk, (B, H, S, d_k), dtype=jnp.float32)
    V = jax.random.normal(kv, (B, H, S, d_v), dtype=jnp.float32)

    # Pad-style key mask exactly as the BERT caller builds it: (B, 1, 1, S_k), True = masked
    # key, broadcast (masked_fill_ broadcasting) over heads and query positions.
    key_is_pad = jnp.zeros((B, S), dtype=bool).at[:, -2:].set(True)
    attn_mask = key_is_pad[:, None, None, :]

    context, attn = scaled_dot_product_attention(Q, K, V, attn_mask, d_k)
    context, attn = jax.block_until_ready((context, attn))

    ref_ctx, ref_attn = reference_sdpa(Q, K, V, attn_mask, d_k)
    assert context.shape == (B, H, S, d_v) and attn.shape == (B, H, S, S)
    assert bool(jnp.allclose(attn, ref_attn, atol=2e-2, rtol=2e-2))
    assert bool(jnp.allclose(context, ref_ctx, atol=2e-2, rtol=2e-2))
    print("KERNEL_OK")
</pallas_src>

<mosaic_0001>
module attributes {stable_mosaic.version = 11 : i64} {
  func.func @kernel(%arg0: i32, %arg1: i32, %arg2: memref<4x8x64xf32, #tpu.memory_space<vmem>>, %arg3: memref<4x8x64xf32, #tpu.memory_space<vmem>>, %arg4: memref<4x8x64xf32, #tpu.memory_space<vmem>>, %arg5: memref<4x1x8xi32, #tpu.memory_space<vmem>>, %arg6: memref<4x8x64xf32, #tpu.memory_space<vmem>>, %arg7: memref<4x8x8xf32, #tpu.memory_space<vmem>>) attributes {dimension_semantics = [#tpu.dimension_semantics<parallel>, #tpu.dimension_semantics<parallel>], iteration_bounds = array<i64: 2, 1>, scalar_prefetch = 0 : i64, scratch_operands = 0 : i64, tpu.core_type = #tpu.core_type<tc>, window_params = [{transform_indices = @transform_0, window_bounds = array<i64: 4, 8, 64>}, {transform_indices = @transform_1, window_bounds = array<i64: 4, 8, 64>}, {transform_indices = @transform_2, window_bounds = array<i64: 4, 8, 64>}, {transform_indices = @transform_3, window_bounds = array<i64: 4, 1, 8>}, {transform_indices = @transform_4, window_bounds = array<i64: 4, 8, 64>}, {transform_indices = @transform_5, window_bounds = array<i64: 4, 8, 8>}]} {
    %c0 = arith.constant 0 : index
    %c0_0 = arith.constant 0 : index
    %c0_1 = arith.constant 0 : index
    %0 = vector.load %arg2[%c0, %c0_0, %c0_1] : memref<4x8x64xf32, #tpu.memory_space<vmem>>, vector<4x8x64xf32>
    %cst = arith.constant 1.250000e-01 : f32
    %1 = vector.broadcast %cst : f32 to vector<4x8x64xf32>
    %2 = arith.mulf %0, %1 : vector<4x8x64xf32>
    %3 = arith.truncf %2 : vector<4x8x64xf32> to vector<4x8x64xbf16>
    %c0_2 = arith.constant 0 : index
    %c0_3 = arith.constant 0 : index
    %c0_4 = arith.constant 0 : index
    %4 = vector.load %arg3[%c0_2, %c0_3, %c0_4] : memref<4x8x64xf32, #tpu.memory_space<vmem>>, vector<4x8x64xf32>
    %5 = arith.truncf %4 : vector<4x8x64xf32> to vector<4x8x64xbf16>
    "tpu.trace_start"() <{level = 10 : i32, message = "bqd,bkd->bqk"}> : () -> ()
    %cst_5 = arith.constant dense<0.000000e+00> : vector<4x8x8xf32>
    %6 = tpu.matmul %3, %5, %cst_5 {dimension_numbers = #tpu.dot_dimension_numbers<[2], [2], [1], [1], [0, 0, 0, 1, 1, 1], [0], [0]>} : vector<4x8x64xbf16>, vector<4x8x64xbf16>, vector<4x8x8xf32> -> vector<4x8x8xf32>
    "tpu.trace_stop"() : () -> ()
    %c0_6 = arith.constant 0 : index
    %c0_7 = arith.constant 0 : index
    %c0_8 = arith.constant 0 : index
    %7 = vector.load %arg5[%c0_6, %c0_7, %c0_8] : memref<4x1x8xi32, #tpu.memory_space<vmem>>, vector<4x1x8xi32>
    %c0_i32 = arith.constant 0 : i32
    %8 = vector.broadcast %c0_i32 : i32 to vector<4x1x8xi32>
    %9 = arith.cmpi ne, %7, %8 : vector<4x1x8xi32>
    %cst_9 = arith.constant -1.000000e+09 : f32
    %10 = vector.shape_cast %9 : vector<4x1x8xi1> to vector<4x1x8xi1>
    %11 = vector.broadcast %10 : vector<4x1x8xi1> to vector<4x8x8xi1>
    %12 = vector.broadcast %cst_9 : f32 to vector<4x8x8xf32>
    %13 = arith.select %11, %12, %6 : vector<4x8x8xi1>, vector<4x8x8xf32>
    %cst_10 = arith.constant dense<0xFF800000> : vector<4x8xf32>
    %14 = vector.multi_reduction <maximumf>, %13, %cst_10 [2] : vector<4x8x8xf32> to vector<4x8xf32>
    %15 = vector.shape_cast %14 : vector<4x8xf32> to vector<4x8x1xf32>
    %16 = vector.broadcast %15 : vector<4x8x1xf32> to vector<4x8x8xf32>
    %17 = arith.subf %13, %16 : vector<4x8x8xf32>
    %18 = math.exp %17 : vector<4x8x8xf32>
    %cst_11 = arith.constant dense<0.000000e+00> : vector<4x8xf32>
    %19 = vector.multi_reduction <add>, %18, %cst_11 [2] : vector<4x8x8xf32> to vector<4x8xf32>
    %20 = vector.shape_cast %19 : vector<4x8xf32> to vector<4x8x1xf32>
    %21 = tpu.reciprocal %20 {approx = true} : vector<4x8x1xf32> -> vector<4x8x1xf32>
    %22 = vector.broadcast %21 : vector<4x8x1xf32> to vector<4x8x8xf32>
    %23 = arith.mulf %18, %22 : vector<4x8x8xf32>
    %c0_12 = arith.constant 0 : index
    %c0_13 = arith.constant 0 : index
    %c0_14 = arith.constant 0 : index
    %24 = vector.load %arg7[%c0_12, %c0_13, %c0_14] : memref<4x8x8xf32, #tpu.memory_space<vmem>>, vector<4x8x8xf32>
    tpu.vector_store %arg7[%c0_12, %c0_13, %c0_14], %23 {strides = array<i32>} : memref<4x8x8xf32, #tpu.memory_space<vmem>>, vector<4x8x8xf32>,
    %25 = arith.truncf %23 : vector<4x8x8xf32> to vector<4x8x8xbf16>
    %c0_15 = arith.constant 0 : index
    %c0_16 = arith.constant 0 : index
    %c0_17 = arith.constant 0 : index
    %26 = vector.load %arg4[%c0_15, %c0_16, %c0_17] : memref<4x8x64xf32, #tpu.memory_space<vmem>>, vector<4x8x64xf32>
    %27 = arith.truncf %26 : vector<4x8x64xf32> to vector<4x8x64xbf16>
    "tpu.trace_start"() <{level = 10 : i32, message = "bqk,bkd->bqd"}> : () -> ()
    %cst_18 = arith.constant dense<0.000000e+00> : vector<4x8x64xf32>
    %28 = tpu.matmul %25, %27, %cst_18 {dimension_numbers = #tpu.dot_dimension_numbers<[2], [1], [1], [2], [0, 0, 0, 1, 1, 2], [0], [0]>} : vector<4x8x8xbf16>, vector<4x8x64xbf16>, vector<4x8x64xf32> -> vector<4x8x64xf32>
    "tpu.trace_stop"() : () -> ()
    %c0_19 = arith.constant 0 : index
    %c0_20 = arith.constant 0 : index
    %c0_21 = arith.constant 0 : index
    %29 = vector.load %arg6[%c0_19, %c0_20, %c0_21] : memref<4x8x64xf32, #tpu.memory_space<vmem>>, vector<4x8x64xf32>
    tpu.vector_store %arg6[%c0_19, %c0_20, %c0_21], %28 {strides = array<i32>} : memref<4x8x64xf32, #tpu.memory_space<vmem>>, vector<4x8x64xf32>,
    return
  }
  func.func @transform_0(%arg0: i32, %arg1: i32) -> (i32, i32, i32) {
    %c0_i32 = arith.constant 0 : i32
    %c0_i32_0 = arith.constant 0 : i32
    return %arg0, %arg1, %c0_i32 : i32, i32, i32
  }
  func.func @transform_1(%arg0: i32, %arg1: i32) -> (i32, i32, i32) {
    %c0_i32 = arith.constant 0 : i32
    %c0_i32_0 = arith.constant 0 : i32
    %c0_i32_1 = arith.constant 0 : i32
    return %arg0, %c0_i32, %c0_i32_0 : i32, i32, i32
  }
  func.func @transform_2(%arg0: i32, %arg1: i32) -> (i32, i32, i32) {
    %c0_i32 = arith.constant 0 : i32
    %c0_i32_0 = arith.constant 0 : i32
    %c0_i32_1 = arith.constant 0 : i32
    return %arg0, %c0_i32, %c0_i32_0 : i32, i32, i32
  }
  func.func @transform_3(%arg0: i32, %arg1: i32) -> (i32, i32, i32) {
    %c0_i32 = arith.constant 0 : i32
    %c0_i32_0 = arith.constant 0 : i32
    %c0_i32_1 = arith.constant 0 : i32
    return %arg0, %c0_i32, %c0_i32_0 : i32, i32, i32
  }
  func.func @transform_4(%arg0: i32, %arg1: i32) -> (i32, i32, i32) {
    %c0_i32 = arith.constant 0 : i32
    %c0_i32_0 = arith.constant 0 : i32
    return %arg0, %arg1, %c0_i32 : i32, i32, i32
  }
  func.func @transform_5(%arg0: i32, %arg1: i32) -> (i32, i32, i32) {
    %c0_i32 = arith.constant 0 : i32
    %c0_i32_0 = arith.constant 0 : i32
    return %arg0, %arg1, %c0_i32 : i32, i32, i32
  }
}

</mosaic_0001>

<bundles_post_ra>
// kernel: tpu_custom_call.1
= control target key start
LH: loop header
LB: loop body
LE: loop exit
PB: predicated region body
PF: predicated region fallthrough
CT: control target
= control target key end

     0   :  { %s1568_s0 = inlined_call_operand.hbm [shape: f32[8,8,64], index: 0, kind: input, shape index: {}]   ;;  %s1569_s1 = inlined_call_operand.hbm [shape: f32[8,8,64], index: 1, kind: input, shape index: {}]   ;;  %s1570_s2 = inlined_call_operand.hbm [shape: f32[8,8,64], index: 2, kind: input, shape index: {}]   ;;  %s1571_s3 = inlined_call_operand.hbm [shape: s32[8,1,8], index: 3, kind: input, shape index: {}]   ;;  %s1572_s4 = inlined_call_operand.hbm [shape: f32[8,8,64], index: 4, kind: output, shape index: {0}]   ;;  %s1573_s5 = inlined_call_operand.hbm [shape: f32[8,8,8], index: 5, kind: output, shape index: {1}]  }
   0x1   :  { %1581 = sst [smem:[#allocation24_spill]] %s1568_s0 }
   0x2   :  { %1582 = sst [smem:[#allocation25_spill]] %s1569_s1 }
   0x3   :  { %1583 = sst [smem:[#allocation26_spill]] %s1572_s4 }
   0x4   :  { %11 = vsyncpa [#allocation3], 0 }
   0x5   :  { %13 = vsyncpa [#allocation3 + $0x1], 0 }
   0x6   :  { %14 = vsyncpa [#allocation6], 0 }
   0x7   :  { %16 = vsyncpa [#allocation6 + $0x1], 0 }
   0x8   :  { %17 = vsyncpa [#allocation9], 0 }
   0x9   :  { %19 = vsyncpa [#allocation9 + $0x1], 0 }
   0xa   :  { %20 = vsyncpa [#allocation4], 0 }
   0xb   :  { %22 = vsyncpa [#allocation4 + $0x1], 0 }
   0xc   :  { %23 = vsyncpa [#allocation12], 0 }
   0xd   :  { %25 = vsyncpa [#allocation12 + $0x1], 0  ;;  %s1322_s18 = smov 0   ;;  %s1324_s19 = smov 0  }
   0xe   :  { %s1326_s20 = smov 0   ;;  %s1328_s21 = smov 0  }
   0xf   :  { %s1330_s22 = smov 0   ;;  %s1332_s23 = smov 0  }
  0x10 LB: > { %1584 = sst [smem:[#allocation18_spill]] %s1263_s18  ;;  %s1353_s24 = sadd.s32 4294967295, %s1283_s23   ;;  %s1283_s23 = sphi %s1332_s23, %s31_s23   ;;  %s1279_s22 = sphi %s1330_s22, %s1608_s22   ;;  %s1275_s21 = sphi %s1328_s21, %s1607_s21   ;;  %s1271_s20 = sphi %s1326_s20, %s1603_s20   ;;  %s1267_s19 = sphi %s1324_s19, %s1606_s19   ;;  %s1263_s18 = sphi %s1322_s18, %s1605_s18  }
  0x11   : > { %1585 = sst [smem:[#allocation19_spill]] %s1271_s20  ;;  %s894_s25 = sadd.s32 4294967294, %s1283_s23  }
  0x12   : > { %1586 = sst [smem:[#allocation20_spill]] %s1283_s23  ;;  %s43_s26 = sadd.s32 1, %s1279_s22 }
  0x13   : > { %s52_s27 = sadd.s32 1, %s1271_s20  ;;  %p45_p0 = scmp.ge.s32.totalorder %s43_s26, 2 }
  0x14   : > { %p59_p1 = scmp.ne.s32.totalorder %s1271_s20, %s1267_s19  ;;  %p60_p2 = scmp.eq.s32.totalorder %s1283_s23, 0 }
  0x15   : > { %p65_p3 = scmp.ne.s32.totalorder %s1267_s19, %s1263_s18  ;;  %s1610_s26 = smov (%p45_p0, %s43_s26), 0 }
  0x16   : > { %1587 = sst [smem:[#allocation21_spill]] %s1610_s26  ;;  %p1365_p4 = por %p60_p2, %p59_p1 }
  0x17   : > { %p66_p5 = scmp.eq.s32.totalorder %s1353_s24, 0  ;;  %s47_s29 = ssub.s32 %s1279_s22, %s1610_s26 }
  0x18   : > { %p169_p6 = scmp.eq.s32.totalorder %s1353_s24, 1  ;;  %p50_p7 = scmp.eq.s32.totalorder %s47_s29, 0 }
  0x19   : > { %p1373_p8 = por %p66_p5, %p65_p3  ;;  %p175_p10 = scmp.eq.s32.totalorder %s894_s25, 1 }
  0x1a   : > { %p1377_p9 = por %p169_p6, %p59_p1  ;;  %p896_p12 = scmp.ge.s32.totalorder %s1283_s23, 2 }
  0x1b   : > { %s1382_s7 = scalar_select %p50_p7, %s1271_s20, %s52_s27  }
  0x1c   : > { %p1384_p11 = por %p175_p10, %p65_p3  ;;  %p968_p13 = scmp.lt.s32.totalorder %s1283_s23, 2 }
  0x1d   : > { %1591 = sst [smem:[#allocation22_spill]] %s1382_s7  ;;  %s1391_s9 = sand.u32 1, %s1271_s20  }
  0x1e   : > { %s1592_s8 = scalar_select %p1384_p11, 1, 0 }
  0x1f   : > { %s1394_s10 = sshll.u32 %s1391_s9, 5  ;;  %s931_s11 = sshll.u32 %s1279_s22, 5 }
  0x20   : > { %1593 = sst [smem:[#allocation23_spill]] %s1592_s8  ;;  %p1399_p0 = pnand %p968_p13, %p1365_p4 }
  0x21   : > { %s246_s13 = sand.u32 1, %s1283_s23   ;;  %s1595_s1 = sld [smem:[#allocation25_spill]] }
  0x22   : > { %s250_s25 = scalar_lea.vmem [#allocation5], %s1394_s10  ;;  %s247_s29 = scalar_lea.sflag [#allocation6], %s246_s13 }
  0x23   : > { %s258_s27 = sshll.u32 %s250_s25, 4  ;;  %s1285_s28 = smov 128   ;;  %s259_s27 = int_to_ptr.vmem [resolvable:$true] %s258_s27 }
  0x24   : > { %s1286_s26 = smov 8   ;;  %p908_p1 = scmp.ge.s32.totalorder %s1283_s23, 1 }
  0x25   : > { %p309_p2 = scmp.lt.s32.totalorder %s1283_s23, 3  ;;  %s1597_s0 = sld [smem:[#allocation24_spill]] }
  0x26   : > { %s227_s13 = scalar_lea.vmem [#allocation2], %s1394_s10  ;;  %s224_s20 = scalar_lea.sflag [#allocation3], %s1391_s9 }
  0x27   : > { %s255_s16 = scalar_lea.hbm %s1595_s1, %s931_s11  ;;  %p1412_p3 = pnand %p908_p1, %p309_p2 }
  0x28   : > { %s256_s17 = sshll.u32 %s255_s16, 4  ;;  %s236_s7 = sshll.u32 %s227_s13, 4  ;;  %s257_s17 = int_to_ptr.hbm [resolvable:$true] %s256_s17  ;;  %s237_s7 = int_to_ptr.vmem [resolvable:$true] %s236_s7 }
  0x29   : > { %954 = dma.hbm_to_vmem [thread:$0]  (!%p1399_p0), %s257_s17, 512, %s259_s27, %s247_s29, %s1285_s28, %s1285_s28, %s1286_s26  }
  0x2a   : > { %s277_s23 = scalar_lea.hbm %s1570_s2, %s931_s11  ;;  %s272_s18 = scalar_lea.vmem [#allocation7], %s1394_s10 }
  0x2b   : > { %s233_s25 = scalar_lea.hbm %s1597_s0, %s931_s11  ;;  %s278_s8 = sshll.u32 %s277_s23, 4  ;;  %s279_s8 = int_to_ptr.hbm [resolvable:$true] %s278_s8 }
  0x2c   : > { %s234_s1 = sshll.u32 %s233_s25, 4  ;;  %s280_s15 = sshll.u32 %s272_s18, 4  ;;  %s235_s1 = int_to_ptr.hbm [resolvable:$true] %s234_s1  ;;  %s281_s15 = int_to_ptr.vmem [resolvable:$true] %s280_s15 }
  0x2d   : > { %951 = dma.hbm_to_vmem [thread:$0]  (!%p1399_p0), %s235_s1, 512, %s237_s7, %s224_s20, %s1285_s28, %s1285_s28, %s1286_s26  }
  0x2e   : > { %957 = dma.hbm_to_vmem [thread:$0]  (!%p1399_p0), %s279_s8, 512, %s281_s15, %s247_s29, %s1285_s28, %s1285_s28, %s1286_s26  }
  0x2f   : > { %s906_s16 = sshll.u32 %s1391_s9, 2  ;;  %s907_s25 = sshll.u32 %s1279_s22, 2 }
  0x30   : > { %s298_s4 = scalar_lea.hbm %s1571_s3, %s907_s25  ;;  %s294_s1 = scalar_lea.vmem [#allocation8], %s906_s16 }
  0x31   : > { %s301_s20 = sshll.u32 %s294_s1, 4  ;;  %s299_s7 = sshll.u32 %s298_s4, 4  ;;  %s302_s20 = int_to_ptr.vmem [resolvable:$true] %s301_s20  ;;  %s300_s7 = int_to_ptr.hbm [resolvable:$true] %s299_s7 }
  0x32   : > { %s291_s11 = scalar_lea.sflag [#allocation9], %s1391_s9  ;;  %s1287_s23 = smov 16  }
  0x33   : > { %s1288_s10 = smov 1   ;;  %313 = sbr.rel (%p1412_p3) target bundleno = 611 (0x263), region = 36 }
  0x34   : > { %960 = dma.hbm_to_vmem [thread:$0]  (!%p1399_p0), %s300_s7, 64, %s302_s20, %s291_s11, %s1287_s23, %s1287_s23, %s1288_s10  }
  0x35   : > { %s1440_s18 = sand.u32 (!%p1412_p3), 1, %s1267_s19  }
  0x36   : > { %s1443_s0 = sshll.u32 (!%p1412_p3), %s1440_s18, 5  ;;  %s316_s4 = scalar_lea.sflag (!%p1412_p3), [#allocation3], %s1440_s18 }
  0x37   : > { %s319_s26 = scalar_lea.vmem (!%p1412_p3), [#allocation2], %s1443_s0 }
  0x38   : > { %1242 = dma.done.wait (%p1373_p8), %s316_s4, 512  }
  0x39   : > { %1244 = vsyncadd (%p1373_p8), %s316_s4, 4294966784  ;;  %s325_s8 = sand.u32 1, %s1353_s24   ;;  %s329_s12 = scalar_lea.vmem [#allocation5], %s1443_s0 }
  0x3a   : > { %s326_s9 = scalar_lea.sflag [#allocation6], %s325_s8 }
  0x3b   : > { %1246 = dma.done.wait (%p1373_p8), %s326_s9, 1024  }
  0x3c   : > { %1248 = vsyncadd (%p1373_p8), %s326_s9, 4294966272  ;;  %s912_s29 = sshll.u32 %s1440_s18, 2  ;;  %s1459_s28 = scalar_lea.vmem [#allocation7], %s1443_s0 }
  0x3d   : > { %s346_s14 = scalar_lea.sflag [#allocation9], %s1440_s18  ;;  %s1462_s17 = scalar_lea.vmem [#allocation8], %s912_s29 }
  0x3e   : > { %1250 = dma.done.wait (%p1373_p8), %s346_s14, 64  }
  0x3f   : > { %1252 = vsyncadd (%p1373_p8), %s346_s14, 4294967232  ;;  %v416_v0 = vld [vmem:[%s329_s12] sm:$0xff]  ;;  %vm424_vm0 = vcmask 523264   ;;  %v418_v1 = vld [vmem:[%s329_s12 + $0x10] sm:$0xff]  ;;  %v1289_v26 = vmov 0   ;;  %vm525_vm6 = vcmask 64512  }
  0x40   : > { %v419_v2 = vld [vmem:[%s329_s12 + $0x18] sm:$0xff]  ;;  %v420_v3 = vpack.c.bf16 %v416_v0, %v416_v0  ;;  %v422_v4 = vpack.c.bf16 %v418_v1, %v418_v1  ;;  %v404_v6 = vld [vmem:[%s319_s26] sm:$0xff]  ;;  %v406_v7 = vld [vmem:[%s319_s26 + $0x10] sm:$0xff]  ;;  %vm589_vm10 = vcmask 1043456   ;;  %s396_s24 = scalar_lea.vmem [#allocation11], %s1443_s0  ;;  %s934_s30 = sshll.u32 %s1275_s21, 5 }
  0x41   : > { %v423_v5 = vpack.c.bf16 %v419_v2, %v419_v2  ;;  %v407_v8 = vld [vmem:[%s319_s26 + $0x18] sm:$0xff]  ;;  %v408_v9 = vmul.f32 0.125, %v404_v6  ;;  %v410_v10 = vmul.f32 0.125, %v406_v7  ;;  %v417_v11 = vld [vmem:[%s329_s12 + $0x8] sm:$0xff]  ;;  %v501_v24 = vld [vmem:[%s1462_s17] sm:$0x1]  ;;  %s703_s25 = scalar_lea.hbm %s1573_s5, %s934_s30 }
  0x42   : > { %v405_v12 = vld [vmem:[%s319_s26 + $0x8] sm:$0xff]  ;;  %v429_v13 = vsel %vm424_vm0, %v420_v3, 0  ;;  %v467_v14 = vsel %vm424_vm0, %v422_v4, 0  ;;  %v421_v16 = vpack.c.bf16 %v417_v11, %v417_v11  ;;  %v411_v17 = vmul.f32 0.125, %v407_v8  ;;  %v502_v25 = vld [vmem:[%s1462_s17 + $0x1] sm:$0x1] }
  0x43   : > { %v486_v15 = vsel %vm424_vm0, %v423_v5, 0  ;;  %438 = vmatpush.bf16.xpose.msra.mxu0 %v429_v13  ;;  %476 = vmatpush.bf16.xpose.msra.mxu2 %v467_v14  ;;  %v409_v19 = vmul.f32 0.125, %v405_v12  ;;  %v412_v20 = vpack.c.bf16 %v408_v9, %v408_v9  ;;  %v414_v21 = vpack.c.bf16 %v410_v10, %v410_v10  ;;  %v503_v28 = vld [vmem:[%s1462_s17 + $0x2] sm:$0x1]  ;;  %v504_v30 = vld [vmem:[%s1462_s17 + $0x3] sm:$0x1] }
  0x44   : > { %495 = vmatpush.bf16.xpose.msra.mxu3 %v486_v15  ;;  %v448_v18 = vsel %vm424_vm0, %v421_v16, 0  ;;  %v415_v22 = vpack.c.bf16 %v411_v17, %v411_v17  ;;  %vm505_vm1 = vcmp.ne.s32.totalorder %v501_v24, 0  ;;  %vm506_vm2 = vcmp.ne.s32.totalorder %v502_v25, 0  ;;  %v578_v9 = vld [vmem:[%s1459_s28] sm:$0xff]  ;;  %v580_v12 = vld [vmem:[%s1459_s28 + $0x10] sm:$0xff]  ;;  %v579_v14 = vld [vmem:[%s1459_s28 + $0x8] sm:$0xff] }
  0x45   : > { %457 = vmatpush.bf16.xpose.msra.mxu1 %v448_v18  ;;  %v413_v23 = vpack.c.bf16 %v409_v19, %v409_v19  ;;  %v509_v27 = vsel %vm505_vm1, 1, %v1289_v26  ;;  %vm507_vm3 = vcmp.ne.s32.totalorder %v503_v28, 0  ;;  %v510_v31 = vsel %vm506_vm2, 1, %v1289_v26  ;;  %v581_v18 = vld [vmem:[%s1459_s28 + $0x18] sm:$0xff]  ;;  %s704_s27 = sshll.u32 %s396_s24, 4  ;;  %s706_s13 = sshll.u32 %s703_s25, 4  ;;  %s705_s27 = int_to_ptr.vmem [resolvable:$true] %s704_s27  ;;  %s707_s13 = int_to_ptr.hbm [resolvable:$true] %s706_s13 }
  0x46   : > { %v513_v29 = vperm.slane %v509_v27, 0  ;;  %v511_v32 = vsel %vm507_vm3, 1, %v1289_v26  ;;  %vm508_vm5 = vcmp.ne.s32.totalorder %v504_v30, 0  ;;  %v514_v33 = vperm.slane %v510_v31, 0  ;;  %s673_s1 = scalar_lea.sflag [#allocation12], %s1440_s18  ;;  %s1175_s20 = sshra.s32 %s707_s13, 4  ;;  %s1176_s20 = int_to_ptr.hbm [resolvable:$true] %s1175_s20 }
  0x47   : > { %v515_v35 = vperm.slane %v511_v32, 0  ;;  %v512_v37 = vsel %vm508_vm5, 1, %v1289_v26  ;;  %v582_v10 = vpack.c.bf16 %v578_v9, %v578_v9  ;;  %v584_v13 = vpack.c.bf16 %v580_v12, %v580_v12  ;;  %s1177_s7 = scalar_lea.hbm %s1176_s20, 32  ;;  %s1181_s10 = scalar_lea.hbm %s1573_s5, 64 }
  0x48   : > { %vm517_vm4 = vcmp.eq.s32.totalorder %v513_v29, 1  ;;  %vm518_vm7 = vcmp.eq.s32.totalorder %v514_v33, 1  ;;  %v516_v40 = vperm.slane %v512_v37, 0  ;;  %v583_v16 = vpack.c.bf16 %v579_v14, %v579_v14  ;;  %p1178_p4 = scmp.ne.s32.totalorder %s1176_s20, %s1177_s7  ;;  %p1182_p7 = scmp.lt.s32.totalorder %s1176_s20, %s1573_s5 }
  0x49   : > { %vm519_vm8 = vcmp.eq.s32.totalorder %v515_v35, 1  ;;  %v591_v11 = vsel %vm589_vm10, %v582_v10, 0  ;;  %v629_v15 = vsel %vm589_vm10, %v584_v13, 0  ;;  %v585_v19 = vpack.c.bf16 %v581_v18, %v581_v18  ;;  %p1183_p8 = scmp.lt.s32.totalorder %s1181_s10, %s1177_s7 }
  0x4a   : > { %915 = vmatmul.msk.bf16.vlgmr.msra.gmra.mxu0 %vm424_vm0, %v412_v20  ;;  %917 = vmatmul.msk.bf16.vlgmr.msra.gmra.mxu2 %vm424_vm0, %v414_v21  ;;  %vm520_vm9 = vcmp.eq.s32.totalorder %v516_v40, 1  ;;  %v610_v17 = vsel %vm589_vm10, %v583_v16, 0  ;;  %p1179_p5 = pnand %p1178_p4, %p1377_p9 }
  0x4b   : > { %918 = vmatmul.msk.bf16.vlgmr.msra.gmra.mxu3 %vm424_vm0, %v415_v22  ;;  %600 = vmatpush.bf16.msrb.mxu0 %v591_v11  ;;  %v648_v20 = vsel %vm589_vm10, %v585_v19, 0  ;;  %p1184_p10 = por %p1183_p8, %p1182_p7 }
  0x4c   : > { %916 = vmatmul.msk.bf16.vlgmr.msra.gmra.mxu1 %vm424_vm0, %v413_v23  ;;  %638 = vmatpush.bf16.msrb.mxu2 %v629_v15  ;;  %p1180_p6 = pneg %p1179_p5 }
  0x4d   : > { %619 = vmatpush.bf16.msrb.mxu1 %v610_v17  ;;  %657 = vmatpush.bf16.msrb.mxu3 %v648_v20 }
  0x4e   : > { %p1185_p13 = pnand %p1184_p10, %p1180_p6 }
  0xc7   : > { %v440_v34 = vpop.f32.mrf.mxu0 }
  0xc8   : > { %v521_v36 = vsel %vm517_vm4, -1e+09, %v440_v34 }
  0xc9   : > { %v526_v38 = vsel %vm525_vm6, %v521_v36, -inf  ;;  %v459_v39 = vpop.f32.mrf.mxu1 }
  0xca   : > { %527 = vmax.xlane.f32.xlu1 %v526_v38  ;;  %v522_v41 = vsel %vm518_vm7, -1e+09, %v459_v39 }
  0xcb   : > { %v529_v46 = vsel %vm525_vm6, %v522_v41, -inf }
  0xcd   : > { %v478_v42 = vpop.f32.mrf.mxu2 }
  0xce   : > { %v523_v43 = vsel %vm519_vm8, -1e+09, %v478_v42  ;;  %v497_v44 = vpop.f32.mrf.mxu3 }
  0xcf   : > { %v532_v45 = vsel %vm525_vm6, %v523_v43, -inf  ;;  %v442_v47 = vpop.f32.mrf.mxu0  ;;  %v524_v49 = vsel %vm520_vm9, -1e+09, %v497_v44 }
  0xd0   : > { %533 = vmax.xlane.f32.xlu0 %v532_v45  ;;  %v535_v51 = vsel %vm525_vm6, %v524_v49, -inf }
  0xd1   : > { %v461_v48 = vpop.f32.mrf.mxu1 }
  0xd2   : > { %530 = vmax.xlane.f32.xlu1 %v529_v46 }
  0xd5   : > { %v480_v50 = vpop.f32.mrf.mxu2 }
  0xd6   : > { %v499_v52 = vpop.f32.mrf.mxu3 }
  0xd8   : > { %536 = vmax.xlane.f32.xlu0 %v535_v51 }
 0x13d   : > { %v528_v53 = vpop.xlane.xlu1 %527 }
 0x13e   : > { %v538_v54 = vsub.f32 %v521_v36, %v528_v53 }
 0x140   : > { %v542_v55 = vmul.f32 1.442695, %v538_v54 }
 0x142   : > { %1025 = vpow2.f32 %v542_v55 }
 0x143   : > { %v534_v56 = vpop.xlane.xlu0 %533 }
 0x144   : > { %v540_v57 = vsub.f32 %v523_v43, %v534_v56 }
 0x145   : > { %v531_v58 = vpop.xlane.xlu1 %530 }
 0x146   : > { %v546_v59 = vmul.f32 1.442695, %v540_v57  ;;  %v539_v60 = vsub.f32 %v522_v41, %v531_v58 }
 0x148   : > { %v1026_v61 = vpop.eup %1025  ;;  %1027 = vpow2.f32 %v546_v59  ;;  %v544_v62 = vmul.f32 1.442695, %v539_v60 }
 0x149   : > { %v550_v63 = vsel %vm525_vm6, %v1026_v61, 0.0 }
 0x14a   : > { %1029 = vpow2.f32 %v544_v62  ;;  %551 = vadd.xlane.f32.xlu0 %v550_v63 }
 0x14b   : > { %v537_v0 = vpop.xlane.xlu0 %536 }
 0x14c   : > { %v541_v1 = vsub.f32 %v524_v49, %v537_v0 }
 0x14e   : > { %v1028_v2 = vpop.eup %1027  ;;  %v548_v3 = vmul.f32 1.442695, %v541_v1 }
 0x14f   : > { %v556_v4 = vsel %vm525_vm6, %v1028_v2, 0.0 }
 0x150   : > { %v1030_v5 = vpop.eup %1029  ;;  %1031 = vpow2.f32 %v548_v3  ;;  %557 = vadd.xlane.f32.xlu2 %v556_v4 }
 0x151   : > { %v553_v6 = vsel %vm525_vm6, %v1030_v5, 0.0 }
 0x152   : > { %554 = vadd.xlane.f32.xlu1 %v553_v6 }
 0x156   : > { %v1032_v7 = vpop.eup %1031 }
 0x157   : > { %v559_v8 = vsel %vm525_vm6, %v1032_v7, 0.0 }
 0x158   : > { %560 = vadd.xlane.f32.xlu2 %v559_v8 }
 0x1bd   : > { %v552_v21 = vpop.xlane.xlu0 %551 }
 0x1be   : > { %1033 = vrcp.f32 %v552_v21 }
 0x1c3   : > { %v558_v22 = vpop.xlane.xlu2 %557 }
 0x1c4   : > { %v1034_v23 = vpop.eup %1033  ;;  %1035 = vrcp.f32 %v558_v22 }
 0x1c5   : > { %v566_v24 = vmul.f32 %v1034_v23, %v1026_v61  ;;  %v555_v25 = vpop.xlane.xlu1 %554 }
 0x1c6   : > { %1037 = vrcp.f32 %v555_v25 }
 0x1c7   : > { %570 = vst.msk [vmem:[%s396_s24] sm:$0xff] %vm525_vm6, %v566_v24  ;;  %v574_v26 = vpack.c.bf16 %v566_v24, %v566_v24 }
 0x1c9   : > { %919 = vmatmul.msk.bf16.vlgmr.msrb.gmra.mxu0 %vm525_vm6, %v574_v26 }
 0x1ca   : > { %v1036_v27 = vpop.eup %1035 }
 0x1cb   : > { %v568_v28 = vmul.f32 %v1036_v27, %v1028_v2  ;;  %v561_v29 = vpop.xlane.xlu2 %560 }
 0x1cc   : > { %v1038_v30 = vpop.eup %1037  ;;  %1039 = vrcp.f32 %v561_v29 }
 0x1cd   : > { %572 = vst.msk [vmem:[%s396_s24 + $0x10] sm:$0xff] %vm525_vm6, %v568_v28  ;;  %v567_v31 = vmul.f32 %v1038_v30, %v1030_v5  ;;  %v576_v32 = vpack.c.bf16 %v568_v28, %v568_v28 }
 0x1cf   : > { %571 = vst.msk [vmem:[%s396_s24 + $0x8] sm:$0xff] %vm525_vm6, %v567_v31  ;;  %921 = vmatmul.msk.bf16.vlgmr.msrb.gmra.mxu2 %vm525_vm6, %v576_v32  ;;  %v575_v33 = vpack.c.bf16 %v567_v31, %v567_v31 }
 0x1d1   : > { %920 = vmatmul.msk.bf16.vlgmr.msrb.gmra.mxu1 %vm525_vm6, %v575_v33 }
 0x1d2   : > { %v1040_v34 = vpop.eup %1039 }
 0x1d3   : > { %v569_v35 = vmul.f32 %v1040_v34, %v1032_v7 }
 0x1d5   : > { %573 = vst.msk [vmem:[%s396_s24 + $0x18] sm:$0xff] %vm525_vm6, %v569_v35  ;;  %v577_v36 = vpack.c.bf16 %v569_v35, %v569_v35 }
 0x1d7   : > { %922 = vmatmul.msk.bf16.vlgmr.msrb.gmra.mxu3 %vm525_vm6, %v577_v36 }
 0x1d8   : > { %1188 = shalt.err (!%p1185_p13)
}
 0x1d9   : > { %s1290_s8 = smov 128   ;;  %s1291_s9 = smov 8  }
 0x1da   : > { %945 = dma.vmem_to_hbm [thread:$0]  (%p1377_p9), %s705_s27, 512, %s707_s13, %s673_s1, %s1290_s8, %s1290_s8, %s1291_s9  }
 0x1db   : > { %s389_s12 = scalar_lea.vmem [#allocation10], %s1443_s0  ;;  %s1598_s14 = sld [smem:[#allocation26_spill]] }
 0x1dc   : > { %s686_s24 = sshll.u32 %s389_s12, 4  ;;  %s668_s0 = scalar_lea.sflag [#allocation4], %s1440_s18  ;;  %s687_s24 = int_to_ptr.vmem [resolvable:$true] %s686_s24 }
 0x1e1   : > { %s685_s17 = scalar_lea.hbm %s1598_s14, %s934_s30  ;;  %s1209_s30 = scalar_lea.hbm %s1598_s14, 64 }
 0x1e2   : > { %s688_s27 = sshll.u32 %s685_s17, 4  ;;  %s689_s27 = int_to_ptr.hbm [resolvable:$true] %s688_s27 }
 0x1e3   : > { %s1203_s15 = sshra.s32 %s689_s27, 4  ;;  %s1204_s15 = int_to_ptr.hbm [resolvable:$true] %s1203_s15 }
 0x1e4   : > { %s1205_s16 = scalar_lea.hbm %s1204_s15, 32  ;;  %p1210_p3 = scmp.lt.s32.totalorder %s1204_s15, %s1598_s14 }
 0x1e5   : > { %p1206_p0 = scmp.ne.s32.totalorder %s1204_s15, %s1205_s16  ;;  %p1211_p4 = scmp.lt.s32.totalorder %s1209_s30, %s1205_s16 }
 0x1e7   : > { %p1207_p1 = pnand %p1206_p0, %p1377_p9  ;;  %p1212_p5 = por %p1211_p4, %p1210_p3 }
 0x1e9   : > { %p1208_p2 = pneg %p1207_p1 }
 0x1eb   : > { %p1213_p6 = pnand %p1212_p5, %p1208_p2 }
 0x246   : > { %v602_v37 = vpop.f32.mrf.mxu0 }
 0x247   : > { %663 = vst.msk [vmem:[%s389_s12] sm:$0xff] %vm424_vm0, %v602_v37 }
 0x24e   : > { %v604_v38 = vpop.f32.mrf.mxu0  ;;  %v621_v39 = vpop.f32.mrf.mxu1 }
 0x24f   : > { %664 = vst.msk [vmem:[%s389_s12 + $0x8] sm:$0xff] %vm424_vm0, %v621_v39 }
 0x252   : > { %v640_v40 = vpop.f32.mrf.mxu2 }
 0x253   : > { %665 = vst.msk [vmem:[%s389_s12 + $0x10] sm:$0xff] %vm424_vm0, %v640_v40 }
 0x256   : > { %v623_v41 = vpop.f32.mrf.mxu1 }
 0x25a   : > { %v642_v42 = vpop.f32.mrf.mxu2  ;;  %v659_v43 = vpop.f32.mrf.mxu3 }
 0x25b   : > { %666 = vst.msk [vmem:[%s389_s12 + $0x18] sm:$0xff] %vm424_vm0, %v659_v43 }
 0x25c   : > { %1216 = shalt.err (!%p1213_p6)
}
 0x25d   : > { %944 = dma.vmem_to_hbm [thread:$0]  (%p1377_p9), %s687_s24, 512, %s689_s27, %s668_s0, %s1290_s8, %s1290_s8, %s1291_s9  }
 0x262   : > { %v661_v44 = vpop.f32.mrf.mxu3 }
 0x263 PF: > { %s1599_s18 = sld [smem:[#allocation18_spill]]  ;;  %p962_p7 = pnand %p896_p12, %p1384_p11 }
 0x264   : > { %s1601_s7 = sld [smem:[#allocation20_spill]] }
 0x265   : > { %p963_p8 = pneg %p962_p7 }
 0x269   : > { %s721_s11 = sand.u32 1, %s1599_s18  }
 0x26a   : > { %s722_s23 = scalar_lea.sflag [#allocation4], %s721_s11 }
 0x26b   : > { %1254 = dma.done.wait (%p963_p8), %s722_s23, 512  }
 0x26c   : > { %1256 = vsyncadd (%p963_p8), %s722_s23, 4294966784  ;;  %s732_s10 = scalar_lea.sflag [#allocation12], %s721_s11 }
 0x26d   : > { %1258 = dma.done.wait (%p963_p8), %s732_s10, 512  }
 0x26e   : > { %1260 = vsyncadd (%p963_p8), %s732_s10, 4294966784  ;;  %s31_s23 = sadd.s32 1, %s1601_s7   ;;  %s1602_s6 = sld [smem:[#allocation19_spill]] }
 0x26f   : > { %p28_p10 = scmp.ge.s32.totalorder %s31_s23, 4   ;;  %s1603_s20 = sld [smem:[#allocation22_spill]] }
 0x270   : > { %s1604_s4 = sld [smem:[#allocation21_spill]]  ;;  %s1605_s18 = smov %s1267_s19 }
 0x271   : > { %s1607_s21 = smov %s1279_s22 }
 0x272   :  { %30 = sbr.rel (!%p28_p10) target bundleno = 16 (0x10), region = 135 }
 0x274   : > { %s1606_s19 = smov %s1602_s6 }
 0x276   : > { %s1608_s22 = smov %s1604_s4 }
 0x277   :  { %738 = vsyncpa [#allocation3], 1 }
 0x278   :  { %740 = vsyncpa [#allocation3 + $0x1], 1 }
 0x279   :  { %741 = vsyncpa [#allocation6], 1 }
 0x27a   :  { %743 = vsyncpa [#allocation6 + $0x1], 1 }
 0x27b   :  { %744 = vsyncpa [#allocation9], 1 }
 0x27c   :  { %746 = vsyncpa [#allocation9 + $0x1], 1 }
 0x27d   :  { %747 = vsyncpa [#allocation4], 1 }
 0x27e   :  { %749 = vsyncpa [#allocation4 + $0x1], 1 }
 0x27f   :  { %750 = vsyncpa [#allocation12], 1 }
 0x280   :  { %752 = vsyncpa [#allocation12 + $0x1], 1 }

</bundles_post_ra>
